<compile_context>
chip_gen: v7x
topology: tpu7x:2x2x1
jax: 0.10.0
libtpu: 0.0.40
codegen_flags: <defaults>
</compile_context>

<pallas_src>
import jax
import jax.numpy as jnp
from jax.experimental import pallas as pl
from jax.experimental.pallas import tpu as pltpu

# layout: gcms (group "common-sense matrix") is (G, P) float32, row-major.
#   Row 0 is the group of interest; column OBJ_NUM_IDX holds the object count
#   (mirrors PyTorch's group_data[0, bk.prop_idx_dict['obj_num']]).
PROP_IDX_DICT = {"obj_num": 2}
OBJ_NUM_IDX = PROP_IDX_DICT["obj_num"]

_LANES = 128      # vreg lane width
_SUBLANES = 8     # vreg sublane count
_BLOCK = _LANES * _SUBLANES  # elements per grid step in the batched kernel


def _check_gcms_shape(shape):
    if len(shape) < 2 or shape[-2] < 1 or shape[-1] <= OBJ_NUM_IDX:
        raise ValueError(
            f"gcms shape {shape} incompatible with obj_num column {OBJ_NUM_IDX}"
        )


# ----------------------------------------------------------------------------
# Single-query kernel: pure scalar-unit work on SMEM, O(1) regardless of G x P.
# ----------------------------------------------------------------------------
def _vfcount_scalar_kernel(in_ref, out_ref):
    # in_ref  : SMEM (2,) f32 — [group_num, num_gt]
    # out_ref : SMEM (1,) f32 — has_label
    group_num = in_ref[0]
    num_gt = in_ref[1]
    hit = jnp.logical_and(group_num != jnp.float32(1.0), group_num == num_gt)
    out_ref[0] = jnp.where(hit, jnp.float32(1.0), jnp.float32(0.0))


@jax.jit
def _vf_count_single_jit(gcms, num_gt_f32):
    """gcms: (G, P) f32 device array, num_gt_f32: traced f32 scalar → f32 scalar."""
    # Slice the single needed element on-device; XLA fuses this, so only 8 bytes
    # ever reach the kernel (no full-gcms HBM→VMEM DMA).
    group_num = jax.lax.slice(
        gcms, (0, OBJ_NUM_IDX), (1, OBJ_NUM_IDX + 1)
    ).reshape(()).astype(jnp.float32)
    packed = jnp.stack([group_num, num_gt_f32.astype(jnp.float32)])  # (2,) f32

    out = pl.pallas_call(
        _vfcount_scalar_kernel,
        out_shape=jax.ShapeDtypeStruct((1,), jnp.float32),
        in_specs=[pl.BlockSpec(memory_space=pltpu.SMEM)],
        out_specs=pl.BlockSpec(memory_space=pltpu.SMEM),
    )(packed)
    return out[0]


def vf_count_pallas(gcms, num_gt):
    """Single query. gcms: (G, P) array-like, num_gt: python int → device f32 scalar."""
    gcms = jnp.asarray(gcms, dtype=jnp.float32)
    _check_gcms_shape(gcms.shape)
    return _vf_count_single_jit(gcms, jnp.float32(num_gt))


# ----------------------------------------------------------------------------
# Batched kernel: N queries → one pallas_call, lane-dense (rows, 128) tiles.
# ----------------------------------------------------------------------------
def _vfcount_batched_kernel(gn_ref, gt_ref, out_ref):
    # gn_ref / gt_ref / out_ref : VMEM (8, 128) f32 tiles.
    gn = gn_ref[...]
    gt = gt_ref[...]
    hit = jnp.logical_and(gn != jnp.float32(1.0), gn == gt)
    out_ref[...] = jnp.where(hit, jnp.float32(1.0), jnp.float32(0.0))


@jax.jit
def _vf_count_batched_jit(gcms_batch, num_gts_f32):
    """gcms_batch: (N, G, P) f32, num_gts_f32: (N,) f32 → (N,) f32."""
    n = gcms_batch.shape[0]
    # Only the obj_num column of row 0 of each query is needed; the slice fuses
    # into XLA and keeps the (N, G, P) tensor out of the kernel's VMEM budget.
    group_nums = gcms_batch[:, 0, OBJ_NUM_IDX].astype(jnp.float32)     # (N,)

    n_pad = ((n + _BLOCK - 1) // _BLOCK) * _BLOCK
    # Pad group_num with 1.0 (degenerate group → 0.0); padded lanes are sliced off.
    gn = jnp.pad(group_nums, (0, n_pad - n), constant_values=1.0)
    gt = jnp.pad(num_gts_f32.astype(jnp.float32), (0, n_pad - n))
    rows = n_pad // _LANES
    gn = gn.reshape(rows, _LANES)
    gt = gt.reshape(rows, _LANES)

    out = pl.pallas_call(
        _vfcount_batched_kernel,
        out_shape=jax.ShapeDtypeStruct((rows, _LANES), jnp.float32),
        grid=(rows // _SUBLANES,),
        in_specs=[
            pl.BlockSpec((_SUBLANES, _LANES), lambda i: (i, 0)),
            pl.BlockSpec((_SUBLANES, _LANES), lambda i: (i, 0)),
        ],
        out_specs=pl.BlockSpec((_SUBLANES, _LANES), lambda i: (i, 0)),
        compiler_params=pltpu.CompilerParams(
            dimension_semantics=("parallel",)  # v7x: shard blocks across both TCs
        ),
    )(gn, gt)
    return out.reshape(-1)[:n]


def vf_count_batch_pallas(gcms_batch, num_gts):
    """Batched queries. gcms_batch: (N, G, P), num_gts: (N,) ints → device (N,) f32."""
    gcms_batch = jnp.asarray(gcms_batch, dtype=jnp.float32)
    if gcms_batch.ndim != 3:
        raise ValueError(f"gcms_batch must be (N, G, P); got shape {gcms_batch.shape}")
    _check_gcms_shape(gcms_batch.shape[1:])
    num_gts = jnp.asarray(num_gts, dtype=jnp.float32)
    if num_gts.shape != (gcms_batch.shape[0],):
        raise ValueError(
            f"num_gts shape {num_gts.shape} does not match N={gcms_batch.shape[0]}"
        )
    return _vf_count_batched_jit(gcms_batch, num_gts)


# ----------------------------------------------------------------------------
# Module-style wrappers
# ----------------------------------------------------------------------------
class VFCountPallas:
    """Pallas-backed stand-in for VFCount. Parameter-free module."""

    def __init__(self, name):
        self.name = name

    def __call__(self, gcms, num_gt_name):
        # TODO(synk): the `None` guard and the name-string parse ("...object_numN")
        # are host-side control flow / string ops with no Pallas equivalent.
        if gcms is None:
            return 0.0
        num_gt = int(num_gt_name.split("object_num")[-1])
        # On-device f32 scalar returned; callers should avoid per-query float()/item()
        # syncs and batch them (or use batch_call below).
        return vf_count_pallas(gcms, num_gt)

    def batch_call(self, gcms_batch, num_gt_names):
        """Evaluate many (gcms, name) queries with one pallas_call (amortizes launch)."""
        num_gts = [int(n.split("object_num")[-1]) for n in num_gt_names]
        return vf_count_batch_pallas(gcms_batch, num_gts)


def _reference(gcms, num_gt_name):
    if gcms is None:
        return 0.0
    group_num = float(gcms[0, OBJ_NUM_IDX])
    if group_num == 1.0:
        return 0.0
    num_gt = int(num_gt_name.split("object_num")[-1])
    return float(num_gt == group_num)


if __name__ == "__main__":
    key = jax.random.PRNGKey(0)
    G, P = 4, 8

    k0, k1 = jax.random.split(key)
    gcms = jax.random.uniform(k0, (G, P), dtype=jnp.float32)
    gcms = gcms.at[0, OBJ_NUM_IDX].set(3.0)          # group contains 3 objects
    gcms_single = gcms.at[0, OBJ_NUM_IDX].set(1.0)   # degenerate single-object group

    mod = VFCountPallas("count")

    # --- single-query path ---
    single_cases = [
        (gcms, "exist_object_num3"),         # match          -> 1.0
        (gcms, "exist_object_num5"),         # mismatch       -> 0.0
        (gcms_single, "exist_object_num1"),  # obj_num == 1   -> 0.0 (early exit)
        (None, "exist_object_num3"),         # None group     -> 0.0
    ]
    single_outs = [mod(g, n) for (g, n) in single_cases]

    # --- batched path: N queries, one pallas_call ---
    N = 5
    counts = jnp.array([3.0, 5.0, 1.0, 2.0, 7.0], dtype=jnp.float32)
    gcms_batch = jax.random.uniform(k1, (N, G, P), dtype=jnp.float32)
    gcms_batch = gcms_batch.at[:, 0, OBJ_NUM_IDX].set(counts)
    batch_names = [
        "exist_object_num3",   # match       -> 1.0
        "exist_object_num4",   # mismatch    -> 0.0
        "exist_object_num1",   # obj_num==1  -> 0.0
        "exist_object_num2",   # match       -> 1.0
        "exist_object_num9",   # mismatch    -> 0.0
    ]
    batch_out = mod.batch_call(gcms_batch, batch_names)

    # Single sync for everything (no per-query host readback).
    single_outs, batch_out = jax.block_until_ready((single_outs, batch_out))

    for (g, n), got in zip(single_cases, single_outs):
        exp = _reference(g, n)
        assert abs(float(got) - exp) < 1e-6, (n, float(got), exp)

    for i, n in enumerate(batch_names):
        exp = _reference(gcms_batch[i], n)
        assert abs(float(batch_out[i]) - exp) < 1e-6, (i, n, float(batch_out[i]), exp)

    print("KERNEL_OK")
</pallas_src>

<mosaic_0001>
module attributes {stable_mosaic.version = 11 : i64} {
  func.func @_vfcount_scalar_kernel(%arg0: memref<2xf32, #tpu.memory_space<smem>>, %arg1: memref<1xf32, #tpu.memory_space<smem>>) attributes {dimension_semantics = [], scalar_prefetch = 0 : i64, scratch_operands = 0 : i64, tpu.core_type = #tpu.core_type<tc>} {
    %c0 = arith.constant 0 : index
    %0 = memref.load %arg0[%c0] : memref<2xf32, #tpu.memory_space<smem>>
    %c1 = arith.constant 1 : index
    %1 = memref.load %arg0[%c1] : memref<2xf32, #tpu.memory_space<smem>>
    %cst = arith.constant 1.000000e+00 : f32
    %2 = arith.cmpf one, %0, %cst : f32
    %3 = arith.cmpf oeq, %0, %1 : f32
    %4 = arith.andi %2, %3 : i1
    %cst_0 = arith.constant 1.000000e+00 : f32
    %cst_1 = arith.constant 0.000000e+00 : f32
    %5 = arith.select %4, %cst_0, %cst_1 : f32
    %c0_2 = arith.constant 0 : index
    %6 = memref.load %arg1[%c0_2] : memref<1xf32, #tpu.memory_space<smem>>
    memref.store %5, %arg1[%c0_2] : memref<1xf32, #tpu.memory_space<smem>>
    return
  }
}

</mosaic_0001>

<bundles_post_ra>
// kernel: _vf_count_single_jit.1
= control target key start
LH: loop header
LB: loop body
LE: loop exit
PB: predicated region body
PF: predicated region fallthrough
CT: control target
= control target key end

     0   :  { %6 = vsyncpa [#allocation4], 0  ;;  %s102_s0 = inlined_call_operand.vmem [shape: f32[2], index: 0, kind: input, shape index: {}]   ;;  %s103_s1 = inlined_call_operand.hbm [shape: f32[1], index: 1, kind: output, shape index: {}]  }
   0x1   :  { %7 = vsyncpa [#allocation3], 0  ;;  %s14_s8 = sshll.u32 %s102_s0, 4  ;;  %s15_s8 = int_to_ptr.vmem [resolvable:$true] %s14_s8 }
   0x2   :  { %s49_s9 = scalar_lea.vmem %s15_s8, 16  ;;  %p54_p1 = scmp.lt.s32.totalorder %s15_s8, %s15_s8 }
   0x3   :  { %p50_p0 = scmp.ne.s32.totalorder %s15_s8, %s49_s9  ;;  %p55_p2 = scmp.lt.s32.totalorder %s49_s9, %s49_s9 }
   0x5   :  { %p56_p3 = por %p55_p2, %p54_p1 }
   0x7   :  { %p57_p4 = pnand %p56_p3, %p50_p0 }
   0x9   :  { %60 = shalt.err (!%p57_p4)
}
   0xa   :  { %s75_s10 = smov [#allocation2]  }
   0xb   :  { %17 = dma.vmem_to_smem %s15_s8, 16, %s75_s10, [#allocation4]  }
   0xc   :  { %71 = dma.done.wait [#allocation4], 16  }
   0xd   :  { %72 = vsyncadd [#allocation4], 4294967280 }
   0xe   :  { %21 = sfence }
   0xf   :  { %s22_s11 = sld [smem:[#allocation2]]  ;;  %s45_s12 = sld [smem:[#allocation2 + $0x1]] }
  0x10   :  { %s61_s15 = scalar_lea.hbm %s103_s1, 16 }
  0x11   :  { %p62_p8 = scmp.ne.s32.totalorder %s103_s1, %s61_s15  ;;  %p65_p9 = scmp.lt.u32.totalorder %s61_s15, %s103_s1 }
  0x13   :  { %p67_p10 = pnand %p65_p9, %p62_p8 }
  0x15   :  { %p24_p5 = scmp.ne.f32.partialorder %s22_s11, 1.0  ;;  %p25_p6 = scmp.eq.f32.partialorder %s22_s11, %s45_s12 }
  0x17   :  { %p26_p7 = pnand %p25_p6, %p24_p5 }
  0x19   :  { %s46_s13 = scalar_select %p26_p7, 0.0, 1.0 }
  0x1b   :  { %30 = sst [smem:[#allocation5]] %s46_s13 }
  0x1c   :  { %70 = shalt.err (!%p67_p10)
}
  0x1d   :  { %s76_s20 = smov [#allocation5]  }
  0x1e   :  { %38 = dma.smem_to_hbm %s76_s20, 16, %s103_s1, [#allocation3]  }
  0x1f   :  { %73 = dma.done.wait [#allocation3], 16  }
  0x20   :  { %74 = vsyncadd [#allocation3], 4294967280 }
  0x21   :  { %42 = sfence }
  0x22   :  { %43 = vsyncpa [#allocation3], 1 }
  0x23   :  { %44 = vsyncpa [#allocation4], 1 }

</bundles_post_ra>
